<compile_context>
chip_gen: v6e
topology: v6e:2x2x1
jax: 0.10.0
libtpu: 0.0.40
codegen_flags: <defaults>
</compile_context>

<pallas_src>
import jax
import jax.numpy as jnp
from jax.experimental import pallas as pl
from jax.experimental.pallas import tpu as pltpu

LANE = 128
MIB = 1024 * 1024

# Budgets chosen to stay inside the scoped-VMEM default on every generation
# (32 MiB scoped of 128 MiB on v5e/v6e, 32 MiB scoped of 64 MiB on v7x).
_FUSED_VMEM_GATE = 12 * MIB     # use the single fused kernel below this size
_AGG_VMEM_BUDGET = 26 * MIB     # working-set budget for tiled kernels
_RESIDENT_B_GATE = 8 * MIB      # keep XW resident in VMEM below this size


def _round_up(x, m):
    return (x + m - 1) // m * m


def _pad2(x, rows, cols):
    r, c = x.shape
    return jnp.pad(x, ((0, rows - r), (0, cols - c)))


def _first_divisor(dim, candidates, pred=None):
    for c in candidates:
        if dim % c == 0 and (pred is None or pred(c)):
            return c
    return LANE


def _pick_row_tile(m, k, n, out_bytes, budget=_AGG_VMEM_BUDGET):
    """Largest row tile (multiple of 128 dividing m) whose working set fits the
    budget; prefers a tile that leaves >= 2 row tiles (megacore sharding)."""
    def need(tm):
        return (2 * tm * k * 2          # double-buffered left-operand tile
                + k * n * 2             # resident right operand (bf16)
                + 2 * tm * n * out_bytes  # double-buffered output tile
                + 8 * n * 4)            # bias tile (sublane-padded)
    cands = [c for c in (2048, 1024, 512, 256, 128)
             if m % c == 0 and need(c) <= budget]
    if not cands:
        return LANE
    for c in cands:                     # descending; first with >=2 row tiles
        if m // c >= 2:
            return c
    return cands[0]


def _vmem_limit(need_bytes):
    return int(min(max(need_bytes + 4 * MIB, 16 * MIB), 48 * MIB))


# --------------------- fused small-graph kernel (one call) -------------------
def _fused_gcn_kernel(a_ref, x_ref, w1_ref, b1_ref, w2_ref, b2_ref, o_ref):
    """Whole 2-layer GCN forward on VMEM-resident operands (small graphs)."""
    a = a_ref[...]
    xw1 = jnp.dot(x_ref[...], w1_ref[...],
                  preferred_element_type=jnp.float32).astype(jnp.bfloat16)
    h1 = (jnp.dot(a, xw1, preferred_element_type=jnp.float32)
          + b1_ref[...]).astype(jnp.bfloat16)
    xw2 = jnp.dot(h1, w2_ref[...],
                  preferred_element_type=jnp.float32).astype(jnp.bfloat16)
    o_ref[...] = (jnp.dot(a, xw2, preferred_element_type=jnp.float32)
                  + b2_ref[...]).astype(o_ref.dtype)


def _fused_gcn(a_p, x_p, w1_p, b1_p, w2_p, b2_p):
    n_p = a_p.shape[0]
    h_p = w1_p.shape[1]
    return pl.pallas_call(
        _fused_gcn_kernel,
        out_shape=jax.ShapeDtypeStruct((n_p, h_p), jnp.float32),
        compiler_params=pltpu.CompilerParams(vmem_limit_bytes=28 * MIB),
    )(a_p, x_p, w1_p, b1_p, w2_p, b2_p)


# --------------------------- projection: O = X @ W ---------------------------
def _proj_kernel(x_ref, w_ref, o_ref):
    o_ref[...] = jnp.dot(x_ref[...], w_ref[...],
                         preferred_element_type=jnp.float32).astype(o_ref.dtype)


def projection_matmul(x, w, out_dtype):
    """Row-tiled matmul, W resident in VMEM, no bias operand (none needed)."""
    m, k = x.shape
    _, n = w.shape
    out_bytes = 4 if out_dtype == jnp.float32 else 2
    tm = _pick_row_tile(m, k, n, out_bytes)
    need = 2 * tm * k * 2 + k * n * 2 + 2 * tm * n * out_bytes
    return pl.pallas_call(
        _proj_kernel,
        out_shape=jax.ShapeDtypeStruct((m, n), out_dtype),
        grid_spec=pltpu.PrefetchScalarGridSpec(
            num_scalar_prefetch=0,
            grid=(m // tm,),
            in_specs=[pl.BlockSpec((tm, k), lambda i: (i, 0)),
                      pl.BlockSpec((k, n), lambda i: (0, 0))],
            out_specs=pl.BlockSpec((tm, n), lambda i: (i, 0)),
        ),
        compiler_params=pltpu.CompilerParams(
            dimension_semantics=("parallel",),
            vmem_limit_bytes=_vmem_limit(need)),
    )(x, w)


# --------------------- aggregation: O = A_hat @ B + bias ---------------------
def _agg_resident_kernel(a_ref, b_ref, bias_ref, o_ref):
    o_ref[...] = (jnp.dot(a_ref[...], b_ref[...],
                          preferred_element_type=jnp.float32)
                  + bias_ref[...]).astype(o_ref.dtype)


def _agg_tiled_kernel(a_ref, b_ref, bias_ref, o_ref, acc_ref):
    k = pl.program_id(1)

    @pl.when(k == 0)
    def _():   # first k-step initialises the accumulator (no zero-store pass)
        acc_ref[...] = jnp.dot(a_ref[...], b_ref[...],
                               preferred_element_type=jnp.float32)

    @pl.when(k != 0)
    def _():
        acc_ref[...] += jnp.dot(a_ref[...], b_ref[...],
                                preferred_element_type=jnp.float32)

    @pl.when(k == pl.num_programs(1) - 1)
    def _():
        o_ref[...] = (acc_ref[...] + bias_ref[...]).astype(o_ref.dtype)


def aggregate(a, b, bias, out_dtype):
    """O = A_hat @ B + bias with B = X @ W ([N_p, H_p]).

    When B fits in VMEM it stays resident and the reduction grid axis
    collapses to a single dot per row tile (pure A_hat-streaming, no
    accumulator / pl.when overhead). Otherwise falls back to k-tiling."""
    m, kdim = a.shape
    _, n = b.shape
    out_bytes = 4 if out_dtype == jnp.float32 else 2

    if kdim * n * 2 <= _RESIDENT_B_GATE:
        tm = _pick_row_tile(m, kdim, n, out_bytes)
        need = 2 * tm * kdim * 2 + kdim * n * 2 + 2 * tm * n * out_bytes + 8 * n * 4
        return pl.pallas_call(
            _agg_resident_kernel,
            out_shape=jax.ShapeDtypeStruct((m, n), out_dtype),
            grid_spec=pltpu.PrefetchScalarGridSpec(
                num_scalar_prefetch=0,
                grid=(m // tm,),
                in_specs=[pl.BlockSpec((tm, kdim), lambda i: (i, 0)),
                          pl.BlockSpec((kdim, n), lambda i: (0, 0)),
                          pl.BlockSpec((1, n), lambda i: (0, 0))],
                out_specs=pl.BlockSpec((tm, n), lambda i: (i, 0)),
            ),
            compiler_params=pltpu.CompilerParams(
                dimension_semantics=("parallel",),
                vmem_limit_bytes=_vmem_limit(need)),
        )(a, b, bias)

    # Fallback: reduction dimension tiled too (XW no longer fits in VMEM).
    tm = _first_divisor(m, (1024, 512, 256, 128))

    def _fits(tk):
        return (2 * tm * tk * 2 + 2 * tk * n * 2 + tm * n * 4
                + 2 * tm * n * out_bytes + 8 * n * 4) <= _AGG_VMEM_BUDGET

    tk = _first_divisor(kdim, (2048, 1024, 512, 256, 128), _fits)
    need = (2 * tm * tk * 2 + 2 * tk * n * 2 + tm * n * 4
            + 2 * tm * n * out_bytes + 8 * n * 4)
    return pl.pallas_call(
        _agg_tiled_kernel,
        out_shape=jax.ShapeDtypeStruct((m, n), out_dtype),
        grid_spec=pltpu.PrefetchScalarGridSpec(
            num_scalar_prefetch=0,
            grid=(m // tm, kdim // tk),
            in_specs=[pl.BlockSpec((tm, tk), lambda i, kk: (i, kk)),
                      pl.BlockSpec((tk, n), lambda i, kk: (kk, 0)),
                      pl.BlockSpec((1, n), lambda i, kk: (0, 0))],
            out_specs=pl.BlockSpec((tm, n), lambda i, kk: (i, 0)),
            scratch_shapes=[pltpu.VMEM((tm, n), jnp.float32)],
        ),
        compiler_params=pltpu.CompilerParams(
            dimension_semantics=("parallel", "arbitrary"),
            vmem_limit_bytes=_vmem_limit(need)),
    )(a, b, bias)


# ------------------------------- forward pass ---------------------------------
def _forward_padded(a_p, x_p, w1_p, b1_p, w2_p, b2_p):
    n_p, f_p = x_p.shape
    h_p = w1_p.shape[1]
    # Rough VMEM footprint of the fully fused single-call kernel.
    fused_need = (n_p * n_p * 2 + n_p * f_p * 2 + (f_p + h_p) * h_p * 2
                  + 2 * h_p * 4 + 4 * n_p * h_p * 4)
    if fused_need <= _FUSED_VMEM_GATE:
        return _fused_gcn(a_p, x_p, w1_p, b1_p, w2_p, b2_p)

    # General tiled path: hoisted projections, A_hat-streaming aggregations.
    xw1 = projection_matmul(x_p, w1_p, jnp.bfloat16)      # [N_p, H_p]
    h1 = aggregate(a_p, xw1, b1_p, jnp.bfloat16)          # [N_p, H_p]
    xw2 = projection_matmul(h1, w2_p, jnp.bfloat16)       # [N_p, H_p]
    return aggregate(a_p, xw2, b2_p, jnp.float32)         # [N_p, H_p]


@jax.jit
def gcn_forward_pallas(a_hat_padded, x, w1, b1, w2, b2):
    """Two stacked GCNConv layers. `a_hat_padded` is the (N_p, N_p) bf16
    normalized adjacency from build_normalized_adjacency_padded_bf16."""
    n, f = x.shape
    h = w1.shape[1]
    n_p = a_hat_padded.shape[0]
    f_p = _round_up(f, LANE)
    h_p = _round_up(h, LANE)

    x_p = _pad2(x, n_p, f_p).astype(jnp.bfloat16)
    w1_p = _pad2(w1, f_p, h_p).astype(jnp.bfloat16)
    w2_p = _pad2(w2, h_p, h_p).astype(jnp.bfloat16)
    b1_p = _pad2(b1.reshape(1, -1), 1, h_p).astype(jnp.float32)
    b2_p = _pad2(b2.reshape(1, -1), 1, h_p).astype(jnp.float32)

    out = _forward_padded(a_hat_padded, x_p, w1_p, b1_p, w2_p, b2_p)
    return out[:n, :h]


# --------------------------------- JAX glue -----------------------------------
def build_normalized_adjacency(edge_index, num_nodes):
    """Dense f32 D^{-1/2}(A+I)D^{-1/2}, PyG gcn_norm convention (A_hat[dst, src])."""
    src, dst = edge_index[0], edge_index[1]
    not_loop = (src != dst).astype(jnp.float32)
    adj = jnp.zeros((num_nodes, num_nodes), jnp.float32)
    adj = adj.at[dst, src].add(not_loop)                 # sum duplicate edges
    adj = adj + jnp.eye(num_nodes, dtype=jnp.float32)    # self-loop weight 1.0
    deg = jnp.sum(adj, axis=1)
    d_inv_sqrt = jnp.where(deg > 0, jax.lax.rsqrt(deg), 0.0)
    return d_inv_sqrt[:, None] * adj * d_inv_sqrt[None, :]


def build_normalized_adjacency_padded_bf16(edge_index, num_nodes, padded_nodes):
    """Build A_hat directly in padded, bf16 form (no extra pad+cast pass)."""
    src, dst = edge_index[0], edge_index[1]
    not_loop = (src != dst).astype(jnp.float32)
    adj = jnp.zeros((num_nodes, num_nodes), jnp.float32)
    adj = adj.at[dst, src].add(not_loop)
    adj = adj + jnp.eye(num_nodes, dtype=jnp.float32)
    deg = jnp.sum(adj, axis=1)
    d = jnp.where(deg > 0, jax.lax.rsqrt(deg), 0.0)
    a_hat_bf16 = (d[:, None] * adj * d[None, :]).astype(jnp.bfloat16)
    out = jnp.zeros((padded_nodes, padded_nodes), jnp.bfloat16)
    return out.at[:num_nodes, :num_nodes].set(a_hat_bf16)


def glorot(key, shape):
    fan_in, fan_out = shape
    limit = jnp.sqrt(6.0 / (fan_in + fan_out))
    return jax.random.uniform(key, shape, jnp.float32, -limit, limit)


def gcn_reference_bf16(a_hat, x, w1, b1, w2, b2):
    """Mirror of the kernel datapath: bf16 matmul inputs, f32 accumulation."""
    bf = lambda t: t.astype(jnp.bfloat16)
    dot = lambda p, q: jnp.dot(p, q, preferred_element_type=jnp.float32)
    xw1 = bf(dot(bf(x), bf(w1)))
    h1 = bf(dot(bf(a_hat), xw1) + b1)
    xw2 = bf(dot(h1, bf(w2)))
    return dot(bf(a_hat), xw2) + b2


def gcn_reference_f32(a_hat, x, w1, b1, w2, b2):
    h1 = a_hat @ (x @ w1) + b1
    return a_hat @ (h1 @ w2) + b2


if __name__ == "__main__":
    # Small deterministic problem: 16 nodes, 8 node features, hidden=32.
    N, F, H, E = 16, 8, 32, 40
    key = jax.random.PRNGKey(0)
    k_x, k_e, k_w1, k_w2 = jax.random.split(key, 4)

    x = jax.random.normal(k_x, (N, F), jnp.float32)

    # Deterministic random undirected edge list (both directions included).
    e_half = jax.random.randint(k_e, (2, E // 2), 0, N)
    edge_index = jnp.concatenate([e_half, e_half[::-1]], axis=1)   # [2, E]

    w1 = glorot(k_w1, (F, H))
    b1 = jnp.zeros((H,), jnp.float32)
    w2 = glorot(k_w2, (H, H))
    b2 = jnp.zeros((H,), jnp.float32)

    n_p = _round_up(N, LANE)
    a_hat_p = build_normalized_adjacency_padded_bf16(edge_index, N, n_p)

    out = gcn_forward_pallas(a_hat_p, x, w1, b1, w2, b2)
    out = jax.block_until_ready(out)

    # f32 A_hat only for the correctness references.
    a_hat = build_normalized_adjacency(edge_index, N)
    ref_bf16 = gcn_reference_bf16(a_hat, x, w1, b1, w2, b2)
    ref_f32 = gcn_reference_f32(a_hat, x, w1, b1, w2, b2)

    assert out.shape == (N, H)
    assert jnp.allclose(out, ref_bf16, atol=2e-3, rtol=2e-3), \
        "mismatch vs bf16-path reference"
    assert jnp.allclose(out, ref_f32, atol=5e-2, rtol=5e-2), \
        "mismatch vs f32 reference"

    print("KERNEL_OK")
</pallas_src>

<mosaic_0001>
module attributes {stable_mosaic.version = 11 : i64} {
  func.func @_fused_gcn_kernel(%arg0: memref<128x128xbf16, #tpu.memory_space<vmem>>, %arg1: memref<128x128xbf16, #tpu.memory_space<vmem>>, %arg2: memref<128x128xbf16, #tpu.memory_space<vmem>>, %arg3: memref<1x128xf32, #tpu.memory_space<vmem>>, %arg4: memref<128x128xbf16, #tpu.memory_space<vmem>>, %arg5: memref<1x128xf32, #tpu.memory_space<vmem>>, %arg6: memref<128x128xf32, #tpu.memory_space<vmem>>) attributes {dimension_semantics = [], scalar_prefetch = 0 : i64, scratch_operands = 0 : i64, tpu.core_type = #tpu.core_type<tc>} {
    %c0 = arith.constant 0 : index
    %c0_0 = arith.constant 0 : index
    %0 = vector.load %arg0[%c0, %c0_0] : memref<128x128xbf16, #tpu.memory_space<vmem>>, vector<128x128xbf16>
    %c0_1 = arith.constant 0 : index
    %c0_2 = arith.constant 0 : index
    %1 = vector.load %arg1[%c0_1, %c0_2] : memref<128x128xbf16, #tpu.memory_space<vmem>>, vector<128x128xbf16>
    %c0_3 = arith.constant 0 : index
    %c0_4 = arith.constant 0 : index
    %2 = vector.load %arg2[%c0_3, %c0_4] : memref<128x128xbf16, #tpu.memory_space<vmem>>, vector<128x128xbf16>
    %cst = arith.constant dense<0.000000e+00> : vector<128x128xf32>
    %3 = tpu.matmul %1, %2, %cst {dimension_numbers = #tpu.dot_dimension_numbers<[1], [0], [0], [1], [0, 0, 1, 1], [], []>} : vector<128x128xbf16>, vector<128x128xbf16>, vector<128x128xf32> -> vector<128x128xf32>
    %4 = arith.truncf %3 : vector<128x128xf32> to vector<128x128xbf16>
    %cst_5 = arith.constant dense<0.000000e+00> : vector<128x128xf32>
    %5 = tpu.matmul %0, %4, %cst_5 {dimension_numbers = #tpu.dot_dimension_numbers<[1], [0], [0], [1], [0, 0, 1, 1], [], []>} : vector<128x128xbf16>, vector<128x128xbf16>, vector<128x128xf32> -> vector<128x128xf32>
    %c0_6 = arith.constant 0 : index
    %c0_7 = arith.constant 0 : index
    %6 = vector.load %arg3[%c0_6, %c0_7] : memref<1x128xf32, #tpu.memory_space<vmem>>, vector<1x128xf32>
    %7 = vector.broadcast %6 : vector<1x128xf32> to vector<128x128xf32>
    %8 = arith.addf %5, %7 : vector<128x128xf32>
    %9 = arith.truncf %8 : vector<128x128xf32> to vector<128x128xbf16>
    %c0_8 = arith.constant 0 : index
    %c0_9 = arith.constant 0 : index
    %10 = vector.load %arg4[%c0_8, %c0_9] : memref<128x128xbf16, #tpu.memory_space<vmem>>, vector<128x128xbf16>
    %cst_10 = arith.constant dense<0.000000e+00> : vector<128x128xf32>
    %11 = tpu.matmul %9, %10, %cst_10 {dimension_numbers = #tpu.dot_dimension_numbers<[1], [0], [0], [1], [0, 0, 1, 1], [], []>} : vector<128x128xbf16>, vector<128x128xbf16>, vector<128x128xf32> -> vector<128x128xf32>
    %12 = arith.truncf %11 : vector<128x128xf32> to vector<128x128xbf16>
    %cst_11 = arith.constant dense<0.000000e+00> : vector<128x128xf32>
    %13 = tpu.matmul %0, %12, %cst_11 {dimension_numbers = #tpu.dot_dimension_numbers<[1], [0], [0], [1], [0, 0, 1, 1], [], []>} : vector<128x128xbf16>, vector<128x128xbf16>, vector<128x128xf32> -> vector<128x128xf32>
    %c0_12 = arith.constant 0 : index
    %c0_13 = arith.constant 0 : index
    %14 = vector.load %arg5[%c0_12, %c0_13] : memref<1x128xf32, #tpu.memory_space<vmem>>, vector<1x128xf32>
    %15 = vector.broadcast %14 : vector<1x128xf32> to vector<128x128xf32>
    %16 = arith.addf %13, %15 : vector<128x128xf32>
    %c0_14 = arith.constant 0 : index
    %c0_15 = arith.constant 0 : index
    %17 = vector.load %arg6[%c0_14, %c0_15] : memref<128x128xf32, #tpu.memory_space<vmem>>, vector<128x128xf32>
    tpu.vector_store %arg6[%c0_14, %c0_15], %16 {strides = array<i32>} : memref<128x128xf32, #tpu.memory_space<vmem>>, vector<128x128xf32>,
    return
  }
}

</mosaic_0001>

<bundles_post_ra>
// kernel: gcn_forward_pallas.1
= control target key start
LH: loop header
LB: loop body
LE: loop exit
PB: predicated region body
PF: predicated region fallthrough
CT: control target
= control target key end

     0   :  { %s1201_s2 = inlined_call_operand.vmem [shape: bf16[128,128], index: 2, kind: input, shape index: {}]   ;;  %s1202_s1 = inlined_call_operand.vmem [shape: bf16[128,128], index: 1, kind: input, shape index: {}]   ;;  %s1203_s0 = inlined_call_operand.vmem [shape: bf16[128,128], index: 0, kind: input, shape index: {}]   ;;  %s1204_s4 = inlined_call_operand.vmem [shape: bf16[128,128], index: 4, kind: input, shape index: {}]   ;;  %s1205_s3 = inlined_call_operand.vmem [shape: f32[1,128], index: 3, kind: input, shape index: {}]   ;;  %s1206_s5 = inlined_call_operand.vmem [shape: f32[1,128], index: 5, kind: input, shape index: {}]   ;;  %s1207_s6 = inlined_call_operand.vmem [shape: f32[128,128], index: 6, kind: output, shape index: {}]  }
   0x1   :  { %v952_v0 = vld [vmem:[%s1201_s2 + $0x38] sm:$0xff]   ;;  %v953_v1 = vld [vmem:[%s1201_s2 + $0x30] sm:$0xff]   ;;  %v954_v2 = vld [vmem:[%s1201_s2 + $0x28] sm:$0xff]  }
   0x2   :  { %824 = vmatprep.subr.bf16.mxu0 %v952_v0  ;;  %v955_v3 = vld [vmem:[%s1201_s2 + $0x20] sm:$0xff]   ;;  %v956_v5 = vld [vmem:[%s1201_s2 + $0x18] sm:$0xff]   ;;  %v957_v6 = vld [vmem:[%s1201_s2 + $0x10] sm:$0xff]  }
   0x3   :  { %825 = vmatpush3.bf16.msra.mxu0 %v952_v0  ;;  %v960_v4 = vld [vmem:[%s1202_s1] sm:$0xff]   ;;  %v958_v7 = vld [vmem:[%s1201_s2 + $0x8] sm:$0xff]   ;;  %v962_v10 = vld [vmem:[%s1202_s1 + $0x10] sm:$0xff]  }
   0x4   :  { %826 = vmatprep.subr.bf16.mxu0 %v953_v1  ;;  %840 = vmatprep.mubr.bf16.mxu0 %v960_v4  ;;  %v959_v8 = vld [vmem:[%s1201_s2] sm:$0xff]   ;;  %v961_v9 = vld [vmem:[%s1202_s1 + $0x8] sm:$0xff]   ;;  %v963_v11 = vld [vmem:[%s1202_s1 + $0x18] sm:$0xff]  }
   0x5   :  { %v964_v12 = vld [vmem:[%s1202_s1 + $0x20] sm:$0xff]   ;;  %v965_v13 = vld [vmem:[%s1202_s1 + $0x28] sm:$0xff]   ;;  %v966_v14 = vld [vmem:[%s1202_s1 + $0x30] sm:$0xff]  }
   0x6   :  { %v967_v15 = vld [vmem:[%s1202_s1 + $0x38] sm:$0xff]   ;;  %v1070_v16 = vld [vmem:[%s1203_s0] sm:$0xff]   ;;  %v977_v18 = vld [vmem:[%s1204_s4 + $0x30] sm:$0xff]  }
   0x7   :  { %827 = vmatpush3.bf16.msra.mxu0 %v953_v1  ;;  %872 = vmatprep.mubr.bf16.mxu1 %v1070_v16  ;;  %v976_v17 = vld [vmem:[%s1204_s4 + $0x38] sm:$0xff]   ;;  %v978_v19 = vld [vmem:[%s1204_s4 + $0x28] sm:$0xff]   ;;  %v979_v20 = vld [vmem:[%s1204_s4 + $0x20] sm:$0xff]  }
   0x8   :  { %828 = vmatprep.subr.bf16.mxu0 %v954_v2  ;;  %v980_v21 = vld [vmem:[%s1204_s4 + $0x18] sm:$0xff]   ;;  %v1091_v46 = vld [vmem:[%s1203_s0 + $0x8] sm:$0xff]   ;;  %v1096_v47 = vld [vmem:[%s1203_s0 + $0x10] sm:$0xff]  }
   0x9   :  { %v1103_v48 = vld [vmem:[%s1203_s0 + $0x18] sm:$0xff]   ;;  %v1108_v49 = vld [vmem:[%s1203_s0 + $0x20] sm:$0xff]   ;;  %v1115_v50 = vld [vmem:[%s1203_s0 + $0x28] sm:$0xff]  }
   0xa   :  { %v1120_v51 = vld [vmem:[%s1203_s0 + $0x30] sm:$0xff]   ;;  %v1127_v52 = vld [vmem:[%s1203_s0 + $0x38] sm:$0xff]   ;;  %v982_v54 = vld [vmem:[%s1204_s4 + $0x8] sm:$0xff]  }
   0xb   :  { %829 = vmatpush3.bf16.msra.mxu0 %v954_v2  ;;  %v981_v53 = vld [vmem:[%s1204_s4 + $0x10] sm:$0xff]   ;;  %v983_v55 = vld [vmem:[%s1204_s4] sm:$0xff]  }
   0xc   :  { %830 = vmatprep.subr.bf16.mxu0 %v955_v3  ;;  %v742_v59 = vld [vmem:[%s1205_s3] ss:$0 sm:$0xff] }
   0xf   :  { %831 = vmatpush3.bf16.msra.mxu0 %v955_v3 }
  0x10   :  { %832 = vmatprep.subr.bf16.mxu0 %v956_v5 }
  0x13   :  { %833 = vmatpush3.bf16.msra.mxu0 %v956_v5 }
  0x14   :  { %834 = vmatprep.subr.bf16.mxu0 %v957_v6 }
  0x17   :  { %835 = vmatpush3.bf16.msra.mxu0 %v957_v6 }
  0x18   :  { %836 = vmatprep.subr.bf16.mxu0 %v958_v7 }
  0x1b   :  { %837 = vmatpush3.bf16.msra.mxu0 %v958_v7 }
  0x1c   :  { %838 = vmatprep.subr.bf16.mxu0 %v959_v8 }
  0x1f   :  { %839 = vmatpush3.bf16.msra.mxu0 %v959_v8 }
  0x20   :  { %888 = vmatprep.subr.bf16.mxu0 %v976_v17 }
  0x22   :  { %841 = vmatmul.mubr.bf16.vlgmr.msra.gmra.mxu0 %v961_v9 }
  0x23   :  { %844 = vmatprep.mubr.bf16.mxu0 %v962_v10  ;;  %889 = vmatpush3.bf16.msra.mxu0 %v976_v17 }
  0x24   :  { %890 = vmatprep.subr.bf16.mxu0 %v977_v18 }
  0x27   :  { %891 = vmatpush3.bf16.msra.mxu0 %v977_v18 }
  0x28   :  { %892 = vmatprep.subr.bf16.mxu0 %v978_v19 }
  0x2a   :  { %845 = vmatmul.mubr.bf16.gmra.mxu0 %v963_v11 }
  0x2b   :  { %848 = vmatprep.mubr.bf16.mxu0 %v964_v12  ;;  %893 = vmatpush3.bf16.msra.mxu0 %v978_v19 }
  0x2c   :  { %894 = vmatprep.subr.bf16.mxu0 %v979_v20 }
  0x2f   :  { %895 = vmatpush3.bf16.msra.mxu0 %v979_v20 }
  0x30   :  { %896 = vmatprep.subr.bf16.mxu0 %v980_v21 }
  0x32   :  { %849 = vmatmul.mubr.bf16.gmra.mxu0 %v965_v13 }
  0x33   :  { %852 = vmatprep.mubr.bf16.mxu0 %v966_v14  ;;  %897 = vmatpush3.bf16.msra.mxu0 %v980_v21 }
  0x34   :  { %898 = vmatprep.subr.bf16.mxu0 %v981_v53 }
  0x37   :  { %899 = vmatpush3.bf16.msra.mxu0 %v981_v53 }
  0x38   :  { %900 = vmatprep.subr.bf16.mxu0 %v982_v54 }
  0x3a   :  { %853 = vmatmul.mubr.bf16.gmra.mxu0 %v967_v15 }
  0x3b   :  { %901 = vmatpush3.bf16.msra.mxu0 %v982_v54 }
  0x3c   :  { %902 = vmatprep.subr.bf16.mxu0 %v983_v55 }
  0x3f   :  { %903 = vmatpush3.bf16.msra.mxu0 %v983_v55 }
  0xe2   :  { %v842_v22 = vpop.f32.mrf.mxu0 }
  0xe4   :  { %v202_v23 = vpop.f32.mrf.mxu0 }
  0xe6   :  { %v843_v24 = vpop.f32.mrf.mxu0 }
  0xe7   :  { %v266_v44 = vpack.c.bf16 %v843_v24, %v842_v22 }
  0xe8   :  { %v205_v25 = vpop.f32.mrf.mxu0 }
  0xe9   :  { %v265_v45 = vpack.c.bf16 %v205_v25, %v202_v23 }
  0xea   :  { %v846_v26 = vpop.f32.mrf.mxu0 }
  0xec   :  { %v218_v27 = vpop.f32.mrf.mxu0 }
  0xee   :  { %v847_v28 = vpop.f32.mrf.mxu0 }
  0xef   :  { %v268_v42 = vpack.c.bf16 %v847_v28, %v846_v26 }
  0xf0   :  { %v221_v29 = vpop.f32.mrf.mxu0 }
  0xf1   :  { %v267_v43 = vpack.c.bf16 %v221_v29, %v218_v27 }
  0xf2   :  { %v850_v30 = vpop.f32.mrf.mxu0 }
  0xf4   :  { %v234_v31 = vpop.f32.mrf.mxu0 }
  0xf6   :  { %v851_v32 = vpop.f32.mrf.mxu0 }
  0xf7   :  { %v270_v40 = vpack.c.bf16 %v851_v32, %v850_v30 }
  0xf8   :  { %v237_v33 = vpop.f32.mrf.mxu0 }
  0xf9   :  { %v269_v41 = vpack.c.bf16 %v237_v33, %v234_v31 }
  0xfa   :  { %v854_v34 = vpop.f32.mrf.mxu0 }
  0xfc   :  { %v250_v35 = vpop.f32.mrf.mxu0 }
  0xfe   :  { %v855_v36 = vpop.f32.mrf.mxu0 }
  0xff   :  { %v272_v37 = vpack.c.bf16 %v855_v36, %v854_v34 }
 0x100   :  { %v253_v38 = vpop.f32.mrf.mxu0 }
 0x101   :  { %v271_v39 = vpack.c.bf16 %v253_v38, %v250_v35  ;;  %856 = vmatprep.subr.bf16.mxu1 %v272_v37 }
 0x102   :  { %857 = vmatpush3.bf16.msra.mxu1 %v272_v37 }
 0x103   :  { %858 = vmatprep.subr.bf16.mxu1 %v271_v39 }
 0x106   :  { %859 = vmatpush3.bf16.msra.mxu1 %v271_v39 }
 0x107   :  { %860 = vmatprep.subr.bf16.mxu1 %v270_v40 }
 0x10a   :  { %861 = vmatpush3.bf16.msra.mxu1 %v270_v40 }
 0x10b   :  { %862 = vmatprep.subr.bf16.mxu1 %v269_v41 }
 0x10e   :  { %863 = vmatpush3.bf16.msra.mxu1 %v269_v41 }
 0x10f   :  { %864 = vmatprep.subr.bf16.mxu1 %v268_v42 }
 0x112   :  { %865 = vmatpush3.bf16.msra.mxu1 %v268_v42 }
 0x113   :  { %866 = vmatprep.subr.bf16.mxu1 %v267_v43 }
 0x116   :  { %867 = vmatpush3.bf16.msra.mxu1 %v267_v43 }
 0x117   :  { %868 = vmatprep.subr.bf16.mxu1 %v266_v44 }
 0x11a   :  { %869 = vmatpush3.bf16.msra.mxu1 %v266_v44 }
 0x11b   :  { %870 = vmatprep.subr.bf16.mxu1 %v265_v45 }
 0x11e   :  { %871 = vmatpush3.bf16.msra.mxu1 %v265_v45 }
 0x121   :  { %873 = vmatmul.mubr.bf16.vlgmr.msra.gmra.mxu1 %v1091_v46 }
 0x122   :  { %876 = vmatprep.mubr.bf16.mxu1 %v1096_v47 }
 0x129   :  { %877 = vmatmul.mubr.bf16.gmra.mxu1 %v1103_v48 }
 0x12a   :  { %880 = vmatprep.mubr.bf16.mxu1 %v1108_v49 }
 0x131   :  { %881 = vmatmul.mubr.bf16.gmra.mxu1 %v1115_v50 }
 0x132   :  { %884 = vmatprep.mubr.bf16.mxu1 %v1120_v51 }
 0x139   :  { %885 = vmatmul.mubr.bf16.gmra.mxu1 %v1127_v52 }
 0x13a   :  { %936 = vmatprep.mubr.bf16.mxu1 %v1070_v16 }
 0x1e1   :  { %v874_v56 = vpop.f32.mrf.mxu1 }
 0x1e2   :  { %v371_v0 = vadd.f32 %v874_v56, %v742_v59 }
 0x1e3   :  { %v362_v57 = vpop.f32.mrf.mxu1 }
 0x1e4   :  { %v363_v62 = vadd.f32 %v742_v59, %v362_v57 }
 0x1e5   :  { %v875_v58 = vpop.f32.mrf.mxu1 }
 0x1e6   :  { %v374_v60 = vadd.f32 %v875_v58, %v742_v59 }
 0x1e7   :  { %v365_v61 = vpop.f32.mrf.mxu1 }
 0x1e8   :  { %v366_v63 = vadd.f32 %v742_v59, %v365_v61  ;;  %v426_v3 = vpack.c.bf16 %v374_v60, %v371_v0  ;;  %v759_v0 = vld [vmem:[%s1206_s5] ss:$0 sm:$0xff] }
 0x1e9   :  { %v878_v1 = vpop.f32.mrf.mxu1 }
 0x1ea   :  { %v425_v2 = vpack.c.bf16 %v366_v63, %v363_v62  ;;  %v387_v10 = vadd.f32 %v878_v1, %v742_v59 }
 0x1eb   :  { %v378_v4 = vpop.f32.mrf.mxu1 }
 0x1ec   :  { %904 = vmatprep.mubr.bf16.mxu0 %v425_v2  ;;  %v379_v8 = vadd.f32 %v742_v59, %v378_v4 }
 0x1ed   :  { %v879_v5 = vpop.f32.mrf.mxu1  ;;  %905 = vmatmul.mubr.bf16.vlgmr.msra.gmra.mxu0 %v426_v3 }
 0x1ee   :  { %v390_v6 = vadd.f32 %v879_v5, %v742_v59 }
 0x1ef   :  { %v381_v7 = vpop.f32.mrf.mxu1 }
 0x1f0   :  { %v382_v9 = vadd.f32 %v742_v59, %v381_v7  ;;  %v428_v13 = vpack.c.bf16 %v390_v6, %v387_v10 }
 0x1f1   :  { %v882_v11 = vpop.f32.mrf.mxu1 }
 0x1f2   :  { %v427_v12 = vpack.c.bf16 %v382_v9, %v379_v8  ;;  %v403_v20 = vadd.f32 %v882_v11, %v742_v59 }
 0x1f3   :  { %v394_v14 = vpop.f32.mrf.mxu1 }
 0x1f4   :  { %908 = vmatprep.mubr.bf16.mxu0 %v427_v12  ;;  %v395_v18 = vadd.f32 %v742_v59, %v394_v14 }
 0x1f5   :  { %v883_v15 = vpop.f32.mrf.mxu1  ;;  %909 = vmatmul.mubr.bf16.gmra.mxu0 %v428_v13 }
 0x1f6   :  { %v406_v16 = vadd.f32 %v883_v15, %v742_v59 }
 0x1f7   :  { %v397_v17 = vpop.f32.mrf.mxu1 }
 0x1f8   :  { %v398_v19 = vadd.f32 %v742_v59, %v397_v17  ;;  %v430_v23 = vpack.c.bf16 %v406_v16, %v403_v20 }
 0x1f9   :  { %v886_v21 = vpop.f32.mrf.mxu1 }
 0x1fa   :  { %v429_v22 = vpack.c.bf16 %v398_v19, %v395_v18  ;;  %v419_v30 = vadd.f32 %v886_v21, %v742_v59 }
 0x1fb   :  { %v410_v24 = vpop.f32.mrf.mxu1 }
 0x1fc   :  { %912 = vmatprep.mubr.bf16.mxu0 %v429_v22  ;;  %v411_v28 = vadd.f32 %v742_v59, %v410_v24 }
 0x1fd   :  { %v887_v25 = vpop.f32.mrf.mxu1  ;;  %913 = vmatmul.mubr.bf16.gmra.mxu0 %v430_v23 }
 0x1fe   :  { %v422_v26 = vadd.f32 %v887_v25, %v742_v59 }
 0x1ff   :  { %v413_v27 = vpop.f32.mrf.mxu1 }
 0x200   :  { %v414_v29 = vadd.f32 %v742_v59, %v413_v27  ;;  %v432_v32 = vpack.c.bf16 %v422_v26, %v419_v30 }
 0x202   :  { %v431_v31 = vpack.c.bf16 %v414_v29, %v411_v28 }
 0x204   :  { %916 = vmatprep.mubr.bf16.mxu0 %v431_v31 }
 0x205   :  { %917 = vmatmul.mubr.bf16.gmra.mxu0 %v432_v32 }
 0x2ad   :  { %v906_v33 = vpop.f32.mrf.mxu0 }
 0x2af   :  { %v531_v34 = vpop.f32.mrf.mxu0 }
 0x2b1   :  { %v907_v35 = vpop.f32.mrf.mxu0 }
 0x2b2   :  { %v595_v62 = vpack.c.bf16 %v907_v35, %v906_v33 }
 0x2b3   :  { %v534_v36 = vpop.f32.mrf.mxu0 }
 0x2b4   :  { %v594_v63 = vpack.c.bf16 %v534_v36, %v531_v34 }
 0x2b5   :  { %v910_v37 = vpop.f32.mrf.mxu0 }
 0x2b7   :  { %v547_v38 = vpop.f32.mrf.mxu0 }
 0x2b9   :  { %v911_v39 = vpop.f32.mrf.mxu0 }
 0x2ba   :  { %v597_v60 = vpack.c.bf16 %v911_v39, %v910_v37 }
 0x2bb   :  { %v550_v40 = vpop.f32.mrf.mxu0 }
 0x2bc   :  { %v596_v61 = vpack.c.bf16 %v550_v40, %v547_v38 }
 0x2bd   :  { %v914_v41 = vpop.f32.mrf.mxu0 }
 0x2bf   :  { %v563_v42 = vpop.f32.mrf.mxu0 }
 0x2c1   :  { %v915_v43 = vpop.f32.mrf.mxu0 }
 0x2c2   :  { %v599_v58 = vpack.c.bf16 %v915_v43, %v914_v41 }
 0x2c3   :  { %v566_v44 = vpop.f32.mrf.mxu0 }
 0x2c4   :  { %v598_v59 = vpack.c.bf16 %v566_v44, %v563_v42 }
 0x2c5   :  { %v918_v45 = vpop.f32.mrf.mxu0 }
 0x2c7   :  { %v579_v53 = vpop.f32.mrf.mxu0 }
 0x2c9   :  { %v919_v54 = vpop.f32.mrf.mxu0 }
 0x2ca   :  { %v601_v55 = vpack.c.bf16 %v919_v54, %v918_v45 }
 0x2cb   :  { %v582_v56 = vpop.f32.mrf.mxu0 }
 0x2cc   :  { %v600_v57 = vpack.c.bf16 %v582_v56, %v579_v53  ;;  %920 = vmatprep.subr.bf16.mxu1 %v601_v55 }
 0x2cd   :  { %921 = vmatpush3.bf16.msra.mxu1 %v601_v55 }
 0x2ce   :  { %922 = vmatprep.subr.bf16.mxu1 %v600_v57 }
 0x2d1   :  { %923 = vmatpush3.bf16.msra.mxu1 %v600_v57 }
 0x2d2   :  { %924 = vmatprep.subr.bf16.mxu1 %v599_v58 }
 0x2d5   :  { %925 = vmatpush3.bf16.msra.mxu1 %v599_v58 }
 0x2d6   :  { %926 = vmatprep.subr.bf16.mxu1 %v598_v59 }
 0x2d9   :  { %927 = vmatpush3.bf16.msra.mxu1 %v598_v59 }
 0x2da   :  { %928 = vmatprep.subr.bf16.mxu1 %v597_v60 }
 0x2dd   :  { %929 = vmatpush3.bf16.msra.mxu1 %v597_v60 }
 0x2de   :  { %930 = vmatprep.subr.bf16.mxu1 %v596_v61 }
 0x2e1   :  { %931 = vmatpush3.bf16.msra.mxu1 %v596_v61 }
 0x2e2   :  { %932 = vmatprep.subr.bf16.mxu1 %v595_v62 }
 0x2e5   :  { %933 = vmatpush3.bf16.msra.mxu1 %v595_v62 }
 0x2e6   :  { %934 = vmatprep.subr.bf16.mxu1 %v594_v63 }
 0x2e9   :  { %935 = vmatpush3.bf16.msra.mxu1 %v594_v63 }
 0x2ec   :  { %937 = vmatmul.mubr.bf16.vlgmr.msra.gmra.mxu1 %v1091_v46 }
 0x2ed   :  { %940 = vmatprep.mubr.bf16.mxu1 %v1096_v47 }
 0x2f4   :  { %941 = vmatmul.mubr.bf16.gmra.mxu1 %v1103_v48 }
 0x2f5   :  { %944 = vmatprep.mubr.bf16.mxu1 %v1108_v49 }
 0x2fc   :  { %945 = vmatmul.mubr.bf16.gmra.mxu1 %v1115_v50 }
 0x2fd   :  { %948 = vmatprep.mubr.bf16.mxu1 %v1120_v51 }
 0x304   :  { %949 = vmatmul.mubr.bf16.gmra.mxu1 %v1127_v52 }
 0x3ac   :  { %v938_v1 = vpop.f32.mrf.mxu1 }
 0x3ad   :  { %v652_v2 = vadd.f32 %v938_v1, %v759_v0 }
 0x3ae   :  { %v643_v3 = vpop.f32.mrf.mxu1 }
 0x3af   :  { %708 = vst [vmem:[%s1207_s6 + $0x10] sm:$0xff] %v652_v2  ;;  %v644_v46 = vadd.f32 %v759_v0, %v643_v3 }
 0x3b0   :  { %v939_v47 = vpop.f32.mrf.mxu1 }
 0x3b1   :  { %706 = vst [vmem:[%s1207_s6] sm:$0xff] %v644_v46  ;;  %v655_v48 = vadd.f32 %v939_v47, %v759_v0 }
 0x3b2   :  { %v646_v49 = vpop.f32.mrf.mxu1 }
 0x3b3   :  { %709 = vst [vmem:[%s1207_s6 + $0x18] sm:$0xff] %v655_v48  ;;  %v647_v50 = vadd.f32 %v759_v0, %v646_v49 }
 0x3b4   :  { %v942_v51 = vpop.f32.mrf.mxu1 }
 0x3b5   :  { %707 = vst [vmem:[%s1207_s6 + $0x8] sm:$0xff] %v647_v50  ;;  %v668_v52 = vadd.f32 %v942_v51, %v759_v0 }
 0x3b6   :  { %v659_v4 = vpop.f32.mrf.mxu1 }
 0x3b7   :  { %712 = vst [vmem:[%s1207_s6 + $0x30] sm:$0xff] %v668_v52  ;;  %v660_v5 = vadd.f32 %v759_v0, %v659_v4 }
 0x3b8   :  { %v943_v6 = vpop.f32.mrf.mxu1 }
 0x3b9   :  { %710 = vst [vmem:[%s1207_s6 + $0x20] sm:$0xff] %v660_v5  ;;  %v671_v7 = vadd.f32 %v943_v6, %v759_v0 }
 0x3ba   :  { %v662_v8 = vpop.f32.mrf.mxu1 }
 0x3bb   :  { %713 = vst [vmem:[%s1207_s6 + $0x38] sm:$0xff] %v671_v7  ;;  %v663_v9 = vadd.f32 %v759_v0, %v662_v8 }
 0x3bc   :  { %v946_v10 = vpop.f32.mrf.mxu1 }
 0x3bd   :  { %711 = vst [vmem:[%s1207_s6 + $0x28] sm:$0xff] %v663_v9  ;;  %v684_v11 = vadd.f32 %v946_v10, %v759_v0 }
 0x3be   :  { %v675_v12 = vpop.f32.mrf.mxu1 }
 0x3bf   :  { %716 = vst [vmem:[%s1207_s6 + $0x50] sm:$0xff] %v684_v11  ;;  %v676_v13 = vadd.f32 %v759_v0, %v675_v12 }
 0x3c0   :  { %v947_v14 = vpop.f32.mrf.mxu1 }
 0x3c1   :  { %714 = vst [vmem:[%s1207_s6 + $0x40] sm:$0xff] %v676_v13  ;;  %v687_v15 = vadd.f32 %v947_v14, %v759_v0 }
 0x3c2   :  { %v678_v16 = vpop.f32.mrf.mxu1 }
 0x3c3   :  { %717 = vst [vmem:[%s1207_s6 + $0x58] sm:$0xff] %v687_v15  ;;  %v679_v17 = vadd.f32 %v759_v0, %v678_v16 }
 0x3c4   :  { %v950_v18 = vpop.f32.mrf.mxu1 }
 0x3c5   :  { %715 = vst [vmem:[%s1207_s6 + $0x48] sm:$0xff] %v679_v17  ;;  %v700_v19 = vadd.f32 %v950_v18, %v759_v0 }
 0x3c6   :  { %v691_v20 = vpop.f32.mrf.mxu1 }
 0x3c7   :  { %720 = vst [vmem:[%s1207_s6 + $0x70] sm:$0xff] %v700_v19  ;;  %v692_v21 = vadd.f32 %v759_v0, %v691_v20 }
 0x3c8   :  { %v951_v22 = vpop.f32.mrf.mxu1 }
 0x3c9   :  { %718 = vst [vmem:[%s1207_s6 + $0x60] sm:$0xff] %v692_v21  ;;  %v703_v23 = vadd.f32 %v951_v22, %v759_v0 }
 0x3ca   :  { %v694_v24 = vpop.f32.mrf.mxu1 }
 0x3cb   :  { %721 = vst [vmem:[%s1207_s6 + $0x78] sm:$0xff] %v703_v23  ;;  %v695_v25 = vadd.f32 %v759_v0, %v694_v24 }
 0x3cd   :  { %719 = vst [vmem:[%s1207_s6 + $0x68] sm:$0xff] %v695_v25 }

</bundles_post_ra>
